<compile_context>
chip_gen: v7x
topology: tpu7x:2x2x1
jax: 0.10.0
libtpu: 0.0.40
codegen_flags: <defaults>
</compile_context>

<pallas_src>
import functools
import math

import jax
import jax.numpy as jnp
from jax import lax
from jax.experimental import pallas as pl
from jax.experimental.pallas import tpu as pltpu


def _round_up(x, m):
    return (x + m - 1) // m * m


def _vmem_limit(step_bytes):
    """Scoped-VMEM request: ~4x the per-step working set (covers double
    buffering + slack), floored at 16 MiB and capped at 48 MiB (v7x headroom)."""
    return int(min(48 * 1024 * 1024, max(4 * step_bytes, 16 * 1024 * 1024)))


def _pick_row_tile(n):
    """Row (token) tile: big tiles amortize the ~0.35us grid-step overhead."""
    for t in (512, 256, 128):
        if n >= t:
            return t
    return _round_up(max(n, 8), 8)


def _pick_col_tile(total):
    """Output-column tile of the fused Wqkvff projection: lane dense and
    preferring 256-multiples so both halves of the 2x256 MXU stay busy."""
    for t in (768, 512, 256, 384, 128):
        if total % t == 0 and total > t:
            return t
    return total  # small configs: single full-width tile


def _pick_ff_chunk(attn_size, intermediate_size):
    """Intermediate-dim chunk for kernel C.  Prefer chunks that also divide the
    qkv column span so GLU input/gate can be read directly from the fused
    projection buffer (no wrapper slice copy)."""
    for t in (768, 512, 384, 256, 128):
        if intermediate_size % t == 0 and attn_size % t == 0:
            return t, True
    for t in (768, 512, 384, 256, 128):
        if intermediate_size % t == 0:
            return t, False
    # TODO(synk): non-128-aligned intermediate sizes fall back to a single
    # full-width chunk (unusual configs only).
    return intermediate_size, False


# --------------------------- Kernel A: pre-norm + Wqkvff ----------------------
def _prenorm_proj_kernel(x_ref, g_ref, b_ref, w_ref, wb_ref, o_ref, xn_ref, *, eps):
    # LayerNorm runs once per row tile (inner column index j == 0) and is cached
    # in VMEM scratch; every column tile reuses it (no redundant VPU/EUP work).
    @pl.when(pl.program_id(1) == 0)
    def _():
        x = x_ref[...].astype(jnp.float32)
        mu = jnp.mean(x, axis=-1, keepdims=True)
        var = jnp.mean((x - mu) * (x - mu), axis=-1, keepdims=True)
        xn = (x - mu) * lax.rsqrt(var + eps)
        xn = xn * g_ref[...].astype(jnp.float32) + b_ref[...].astype(jnp.float32)
        xn_ref[...] = xn.astype(xn_ref.dtype)

    # Weight is pre-transposed to (in, out): canonical (M,K)x(K,N) MXU matmul.
    acc = lax.dot_general(
        xn_ref[...], w_ref[...],
        dimension_numbers=(((1,), (0,)), ((), ())),
        preferred_element_type=jnp.float32)
    o_ref[...] = (acc + wb_ref[...].astype(jnp.float32)).astype(o_ref.dtype)


def prenorm_wqkvff(x, ln_g, ln_b, w_t, wb, *, eps, tm):
    n_pad, h = x.shape
    o_total = w_t.shape[1]
    tn = _pick_col_tile(o_total)
    n_row = n_pad // tm
    itemsize = jnp.dtype(x.dtype).itemsize
    step_bytes = (2 * tm * h + h * tn + tn + tm * tn + 2 * h) * itemsize
    cost = pl.CostEstimate(
        flops=2 * n_pad * h * o_total,
        transcendentals=n_pad,
        bytes_accessed=(n_pad * h + n_row * o_total * h + n_pad * o_total) * itemsize)
    return pl.pallas_call(
        functools.partial(_prenorm_proj_kernel, eps=eps),
        out_shape=jax.ShapeDtypeStruct((n_pad, o_total), x.dtype),
        grid=(n_row, o_total // tn),
        in_specs=[
            pl.BlockSpec((tm, h), lambda i, j: (i, 0)),   # row tile (fetched once per i)
            pl.BlockSpec((1, h), lambda i, j: (0, 0)),    # LN gamma (resident)
            pl.BlockSpec((1, h), lambda i, j: (0, 0)),    # LN beta  (resident)
            pl.BlockSpec((h, tn), lambda i, j: (0, j)),   # (in,out) weight column tiles
            pl.BlockSpec((1, tn), lambda i, j: (0, j)),   # bias column tiles
        ],
        out_specs=pl.BlockSpec((tm, tn), lambda i, j: (i, j)),
        scratch_shapes=[pltpu.VMEM((tm, h), w_t.dtype)],
        compiler_params=pltpu.CompilerParams(
            dimension_semantics=("parallel", "arbitrary"),
            vmem_limit_bytes=_vmem_limit(step_bytes)),
        cost_estimate=cost,
    )(x, ln_g, ln_b, w_t, wb)


# ------------- Kernel B: flash-style unpadded segment-masked attention --------
def _flash_attn_kernel(q_ref, k_ref, v_ref, segq_ref, segk_ref, o_ref,
                       m_ref, l_ref, acc_ref, *, scale):
    kv = pl.program_id(2)

    @pl.when(kv == 0)
    def _():
        m_ref[...] = jnp.full(m_ref.shape, -jnp.inf, dtype=m_ref.dtype)
        l_ref[...] = jnp.zeros(l_ref.shape, dtype=l_ref.dtype)
        acc_ref[...] = jnp.zeros(acc_ref.shape, dtype=acc_ref.dtype)

    q = q_ref[...].astype(jnp.float32)                     # (tq, hd)
    k = k_ref[...].astype(jnp.float32)                     # (tk, hd)
    s = lax.dot_general(q, k, dimension_numbers=(((1,), (1,)), ((), ())),
                        preferred_element_type=jnp.float32) * scale      # (tq, tk)
    mask = segq_ref[...] == segk_ref[...]                  # (tq,1)==(1,tk) -> (tq,tk)
    s = jnp.where(mask, s, -1e30)                          # score path stays f32

    m_prev = m_ref[...]
    m_new = jnp.maximum(m_prev, jnp.max(s, axis=-1, keepdims=True))
    alpha = jnp.exp(m_prev - m_new)
    p = jnp.exp(s - m_new)
    l_ref[...] = alpha * l_ref[...] + jnp.sum(p, axis=-1, keepdims=True)
    acc_ref[...] = alpha * acc_ref[...] + lax.dot_general(
        p.astype(v_ref.dtype), v_ref[...],
        dimension_numbers=(((1,), (0,)), ((), ())),
        preferred_element_type=jnp.float32)
    m_ref[...] = m_new

    @pl.when(kv == pl.num_programs(2) - 1)
    def _():
        inv_l = pl.reciprocal(l_ref[...], approx=True)     # EUP slot, essentially free
        o_ref[...] = (acc_ref[...] * inv_l).astype(o_ref.dtype)


def unpadded_flash_attention(q, k, v, seg_col, seg_row, *, tq, tk):
    nh, n_pad, hd = q.shape
    itemsize = jnp.dtype(q.dtype).itemsize
    n_q = n_pad // tq
    step_bytes = (tq * hd + 2 * tk * hd + tq * hd + tq + tk + 3 * tq * hd) * 4
    cost = pl.CostEstimate(
        flops=4 * nh * n_pad * n_pad * hd,
        transcendentals=nh * n_pad * n_pad,
        bytes_accessed=(2 * nh * n_pad * hd + 2 * n_q * nh * n_pad * hd
                        + 2 * n_pad) * itemsize)
    return pl.pallas_call(
        functools.partial(_flash_attn_kernel, scale=1.0 / math.sqrt(hd)),
        out_shape=jax.ShapeDtypeStruct((nh, n_pad, hd), q.dtype),
        grid=(nh, n_q, n_pad // tk),
        in_specs=[
            pl.BlockSpec((None, tq, hd), lambda h, i, j: (h, i, 0)),  # Q tile
            pl.BlockSpec((None, tk, hd), lambda h, i, j: (h, j, 0)),  # K tile
            pl.BlockSpec((None, tk, hd), lambda h, i, j: (h, j, 0)),  # V tile
            pl.BlockSpec((tq, 1), lambda h, i, j: (i, 0)),            # seg ids (queries)
            pl.BlockSpec((1, tk), lambda h, i, j: (0, j)),            # seg ids (keys)
        ],
        out_specs=pl.BlockSpec((None, tq, hd), lambda h, i, j: (h, i, 0)),
        scratch_shapes=[pltpu.VMEM((tq, 1), jnp.float32),    # running max m
                        pltpu.VMEM((tq, 1), jnp.float32),    # running denom l
                        pltpu.VMEM((tq, hd), jnp.float32)],  # output accumulator
        compiler_params=pltpu.CompilerParams(
            dimension_semantics=("parallel", "parallel", "arbitrary"),
            vmem_limit_bytes=_vmem_limit(step_bytes)),
        cost_estimate=cost,
    )(q, k, v, seg_col, seg_row)


# ------------- Kernel C: GLU + output projections + residual add --------------
def _fused_output_kernel(x_ref, ctx_ref, ffi_ref, ffg_ref, awo_ref, awb_ref,
                         mwo_ref, mwb_ref, o_ref, acc_ref, *, num_heads, head_dim):
    c = pl.program_id(1)

    @pl.when(c == 0)
    def _():
        # residual + both projection biases + attention output projection.
        acc = (x_ref[...].astype(jnp.float32)
               + awb_ref[...].astype(jnp.float32)
               + mwb_ref[...].astype(jnp.float32))
        # Per-head projection consumes ctx in its (heads, rows, hd) layout,
        # avoiding an HBM transpose back to (rows, H).
        for h in range(num_heads):
            acc = acc + lax.dot_general(
                ctx_ref[h], awo_ref[h * head_dim:(h + 1) * head_dim, :],
                dimension_numbers=(((1,), (0,)), ((), ())),
                preferred_element_type=jnp.float32)
        acc_ref[...] = acc

    # Parallel GLU over one intermediate-dim chunk, accumulated in f32.
    inp = ffi_ref[...].astype(jnp.float32)
    gate = ffg_ref[...].astype(jnp.float32)
    # TODO(synk): FlexBERT configs may use exact (erf) GELU; tanh approximation used here.
    glu = jax.nn.gelu(inp, approximate=True) * gate
    acc_ref[...] += lax.dot_general(
        glu.astype(mwo_ref.dtype), mwo_ref[...],
        dimension_numbers=(((1,), (0,)), ((), ())),
        preferred_element_type=jnp.float32)

    @pl.when(c == pl.num_programs(1) - 1)
    def _():
        o_ref[...] = acc_ref[...].astype(o_ref.dtype)


def fused_output(x, ctx, ff_src, awo_t, awb, mwo_t, mwb, *, num_heads, head_dim,
                 intermediate_size, tm, tff, in_blk_off, gate_blk_off):
    n_pad, h = x.shape
    nh = ctx.shape[0]
    n_chunks = max(intermediate_size // tff, 1)
    itemsize = jnp.dtype(x.dtype).itemsize
    step_bytes = (tm * h + nh * tm * head_dim + 2 * tm * tff + h * h + h
                  + tff * h + h + tm * h) * itemsize + tm * h * 4
    cost = pl.CostEstimate(
        flops=2 * n_pad * h * h + 2 * n_pad * intermediate_size * h
              + 10 * n_pad * intermediate_size,
        transcendentals=n_pad * intermediate_size,
        bytes_accessed=(n_pad * (3 * h + 2 * intermediate_size)
                        + h * h + intermediate_size * h) * itemsize)
    return pl.pallas_call(
        functools.partial(_fused_output_kernel, num_heads=num_heads, head_dim=head_dim),
        out_shape=jax.ShapeDtypeStruct((n_pad, h), x.dtype),
        grid=(n_pad // tm, n_chunks),
        in_specs=[
            pl.BlockSpec((tm, h), lambda r, c: (r, 0)),                  # residual rows
            pl.BlockSpec((nh, tm, head_dim), lambda r, c: (0, r, 0)),    # attention ctx
            pl.BlockSpec((tm, tff), lambda r, c: (r, in_blk_off + c)),   # GLU input chunk
            pl.BlockSpec((tm, tff), lambda r, c: (r, gate_blk_off + c)),  # GLU gate chunk
            pl.BlockSpec((h, h), lambda r, c: (0, 0)),                   # attn Wo (in,out)
            pl.BlockSpec((1, h), lambda r, c: (0, 0)),
            pl.BlockSpec((tff, h), lambda r, c: (c, 0)),                 # mlp Wo (in,out) chunk
            pl.BlockSpec((1, h), lambda r, c: (0, 0)),
        ],
        out_specs=pl.BlockSpec((tm, h), lambda r, c: (r, 0)),
        scratch_shapes=[pltpu.VMEM((tm, h), jnp.float32)],               # f32 accumulator
        compiler_params=pltpu.CompilerParams(
            dimension_semantics=("parallel", "arbitrary"),
            vmem_limit_bytes=_vmem_limit(step_bytes)),
        cost_estimate=cost,
    )(x, ctx, ff_src, ff_src, awo_t, awb, mwo_t, mwb)


# ------------------------------ Layer wrapper ---------------------------------
def prepare_params(params):
    """One-time parameter prep: transpose PyTorch (out,in) weights to (in,out) so
    every kernel feeds the MXU a canonical (M,K)x(K,N) matmul (no per-tile
    relayout), and reshape 1-D vectors to lane-major (1, D)."""
    return {
        "ln_g": params["ln_g"].reshape(1, -1),
        "ln_b": params["ln_b"].reshape(1, -1),
        "wqkvff_t": params["wqkvff"].T,
        "wqkvff_b": params["wqkvff_b"].reshape(1, -1),
        "attn_wo_t": params["attn_wo"].T,
        "attn_wo_b": params["attn_wo_b"].reshape(1, -1),
        "mlp_wo_t": params["mlp_wo"].T,
        "mlp_wo_b": params["mlp_wo_b"].reshape(1, -1),
    }


def flex_bert_unpad_parallel_prenorm_layer(hidden_states, cu_seqlens, max_seqlen,
                                           prepared, *, num_heads, intermediate_size,
                                           layer_norm_eps=1e-12):
    """hidden_states: (total_nnz, H); cu_seqlens: (batch+1,) int32 cumulative lengths."""
    del max_seqlen  # segment-id masking handles variable lengths directly
    n, h = hidden_states.shape
    assert h % num_heads == 0
    hd = h // num_heads
    attn_size = 3 * h

    tm = _pick_row_tile(n)
    n_pad = _round_up(n, tm)
    pad = n_pad - n

    x_p = jnp.pad(hidden_states, ((0, pad), (0, 0)))
    # Segment id per token from cu_seqlens; padded tokens get -1 (match only themselves).
    seg = (jnp.searchsorted(cu_seqlens, jnp.arange(n, dtype=jnp.int32), side="right")
           - 1).astype(jnp.int32)
    seg = jnp.pad(seg, (0, pad), constant_values=-1)
    seg_col = seg.reshape(n_pad, 1)
    seg_row = seg.reshape(1, n_pad)

    # --- Kernel A: fused pre-LayerNorm + Wqkvff projection ---
    proj = prenorm_wqkvff(x_p, prepared["ln_g"], prepared["ln_b"],
                          prepared["wqkvff_t"], prepared["wqkvff_b"],
                          eps=layer_norm_eps, tm=tm)

    # q/k/v in (heads, tokens, head_dim) layout for the flash kernel.
    # TODO(synk): fold this split/transpose into kernel A's epilogue (head-aligned
    # column tiling) to remove the remaining wrapper-side HBM round trip.
    def to_heads(t):
        return t.reshape(n_pad, num_heads, hd).transpose(1, 0, 2)

    q = to_heads(proj[:, :h])
    k = to_heads(proj[:, h:2 * h])
    v = to_heads(proj[:, 2 * h:attn_size])

    # --- Kernel B: flash-style (online-softmax, KV-tiled) unpadded attention ---
    t_attn = 128 if n_pad % 128 == 0 else n_pad
    ctx = unpadded_flash_attention(q, k, v, seg_col, seg_row, tq=t_attn, tk=t_attn)

    # --- Kernel C: GLU + attention/MLP output projections + residual add ---
    tff, direct = _pick_ff_chunk(attn_size, intermediate_size)
    if direct:
        ff_src = proj                       # read GLU input/gate straight out of proj
        in_off = attn_size // tff
        gate_off = (attn_size + intermediate_size) // tff
    else:
        ff_src = proj[:, attn_size:]        # fallback: one extra activation slice
        in_off = 0
        gate_off = max(intermediate_size // tff, 1)
    out = fused_output(x_p, ctx, ff_src,
                       prepared["attn_wo_t"], prepared["attn_wo_b"],
                       prepared["mlp_wo_t"], prepared["mlp_wo_b"],
                       num_heads=num_heads, head_dim=hd,
                       intermediate_size=intermediate_size, tm=tm, tff=tff,
                       in_blk_off=in_off, gate_blk_off=gate_off)
    return out[:n]


# ------------------------------- Reference ------------------------------------
def _reference(x, cu_seqlens, params, *, num_heads, intermediate_size, eps):
    n, h = x.shape
    hd = h // num_heads
    attn_size = 3 * h
    xf = x.astype(jnp.float32)
    mu = jnp.mean(xf, -1, keepdims=True)
    var = jnp.mean((xf - mu) ** 2, -1, keepdims=True)
    xn = (xf - mu) * lax.rsqrt(var + eps) * params["ln_g"] + params["ln_b"]
    proj = xn @ params["wqkvff"].T + params["wqkvff_b"]
    qkv, ff = proj[:, :attn_size], proj[:, attn_size:]
    q, k, v = jnp.split(qkv, 3, axis=-1)
    q = q.reshape(n, num_heads, hd).transpose(1, 0, 2)
    k = k.reshape(n, num_heads, hd).transpose(1, 0, 2)
    v = v.reshape(n, num_heads, hd).transpose(1, 0, 2)
    seg = jnp.searchsorted(cu_seqlens, jnp.arange(n, dtype=jnp.int32), side="right") - 1
    mask = seg[:, None] == seg[None, :]
    s = jnp.einsum("hqd,hkd->hqk", q, k) / math.sqrt(hd)
    s = jnp.where(mask[None], s, -1e30)
    p = jax.nn.softmax(s, axis=-1)
    ctx = jnp.einsum("hqk,hkd->hqd", p, v).transpose(1, 0, 2).reshape(n, h)
    attn_out = ctx @ params["attn_wo"].T + params["attn_wo_b"]
    inp, gate = ff[:, :intermediate_size], ff[:, intermediate_size:]
    glu = jax.nn.gelu(inp, approximate=True) * gate
    mlp_out = glu @ params["mlp_wo"].T + params["mlp_wo_b"]
    return (xf + attn_out + mlp_out).astype(x.dtype)


if __name__ == "__main__":
    hidden = 128
    num_heads = 2
    intermediate = 256
    eps = 1e-12
    seqlens = [100, 120]
    total_nnz = sum(seqlens)
    max_seqlen = max(seqlens)
    attn_size = 3 * hidden
    mlp_size = 2 * intermediate

    key = jax.random.PRNGKey(0)
    ks = jax.random.split(key, 9)
    hidden_states = jax.random.normal(ks[0], (total_nnz, hidden), dtype=jnp.float32)
    cu_seqlens = jnp.array([0, seqlens[0], seqlens[0] + seqlens[1]], dtype=jnp.int32)

    params = {
        "ln_g": 1.0 + 0.1 * jax.random.normal(ks[1], (hidden,), dtype=jnp.float32),
        "ln_b": 0.1 * jax.random.normal(ks[2], (hidden,), dtype=jnp.float32),
        "wqkvff": 0.02 * jax.random.normal(ks[3], (attn_size + mlp_size, hidden), dtype=jnp.float32),
        "wqkvff_b": 0.02 * jax.random.normal(ks[4], (attn_size + mlp_size,), dtype=jnp.float32),
        "attn_wo": 0.02 * jax.random.normal(ks[5], (hidden, hidden), dtype=jnp.float32),
        "attn_wo_b": 0.02 * jax.random.normal(ks[6], (hidden,), dtype=jnp.float32),
        "mlp_wo": 0.02 * jax.random.normal(ks[7], (hidden, intermediate), dtype=jnp.float32),
        "mlp_wo_b": 0.02 * jax.random.normal(ks[8], (hidden,), dtype=jnp.float32),
    }

    prepared = prepare_params(params)   # one-time weight transposes (in, out) layout
    out = flex_bert_unpad_parallel_prenorm_layer(
        hidden_states, cu_seqlens, max_seqlen, prepared,
        num_heads=num_heads, intermediate_size=intermediate, layer_norm_eps=eps)
    out = jax.block_until_ready(out)

    ref = _reference(hidden_states, cu_seqlens, params,
                     num_heads=num_heads, intermediate_size=intermediate, eps=eps)
    assert out.shape == (total_nnz, hidden), out.shape
    max_err = float(jnp.max(jnp.abs(out - ref)))
    assert jnp.allclose(out, ref, atol=2e-3, rtol=2e-3), f"max abs err {max_err}"
    print("KERNEL_OK")
</pallas_src>

<mosaic_0001>
module attributes {stable_mosaic.version = 11 : i64} {
  func.func @_prenorm_proj_kernel(%arg0: i32, %arg1: i32, %arg2: memref<128x128xf32, #tpu.memory_space<vmem>>, %arg3: memref<1x128xf32, #tpu.memory_space<vmem>>, %arg4: memref<1x128xf32, #tpu.memory_space<vmem>>, %arg5: memref<128x128xf32, #tpu.memory_space<vmem>>, %arg6: memref<1x128xf32, #tpu.memory_space<vmem>>, %arg7: memref<128x128xf32, #tpu.memory_space<vmem>>, %arg8: memref<128x128xf32, #tpu.memory_space<vmem>>) attributes {dimension_semantics = [#tpu.dimension_semantics<parallel>, #tpu.dimension_semantics<arbitrary>], iteration_bounds = array<i64: 2, 7>, scalar_prefetch = 0 : i64, scratch_operands = 1 : i64, tpu.core_type = #tpu.core_type<tc>, window_params = [{transform_indices = @transform_0, window_bounds = array<i64: 128, 128>}, {pipeline_mode = #tpu.pipeline_mode<synchronous>, transform_indices = @transform_1, window_bounds = array<i64: 1, 128>}, {pipeline_mode = #tpu.pipeline_mode<synchronous>, transform_indices = @transform_2, window_bounds = array<i64: 1, 128>}, {transform_indices = @transform_3, window_bounds = array<i64: 128, 128>}, {transform_indices = @transform_4, window_bounds = array<i64: 1, 128>}, {transform_indices = @transform_5, window_bounds = array<i64: 128, 128>}]} {
    %c0_i32 = arith.constant 0 : i32
    %0 = arith.cmpi eq, %arg1, %c0_i32 : i32
    %1 = arith.extui %0 : i1 to i32
    %c0_i32_0 = arith.constant 0 : i32
    %2 = arith.cmpi ne, %1, %c0_i32_0 : i32
    scf.if %2 {
      %c0_8 = arith.constant 0 : index
      %c0_9 = arith.constant 0 : index
      %10 = vector.load %arg2[%c0_8, %c0_9] : memref<128x128xf32, #tpu.memory_space<vmem>>, vector<128x128xf32>
      %cst_10 = arith.constant dense<0.000000e+00> : vector<128xf32>
      %11 = vector.multi_reduction <add>, %10, %cst_10 [1] : vector<128x128xf32> to vector<128xf32>
      %12 = vector.shape_cast %11 : vector<128xf32> to vector<128x1xf32>
      %cst_11 = arith.constant 1.280000e+02 : f32
      %13 = vector.broadcast %cst_11 : f32 to vector<128x1xf32>
      %14 = arith.divf %12, %13 : vector<128x1xf32>
      %15 = vector.broadcast %14 : vector<128x1xf32> to vector<128x128xf32>
      %16 = arith.subf %10, %15 : vector<128x128xf32>
      %17 = vector.broadcast %14 : vector<128x1xf32> to vector<128x128xf32>
      %18 = arith.subf %10, %17 : vector<128x128xf32>
      %19 = arith.mulf %16, %18 : vector<128x128xf32>
      %cst_12 = arith.constant dense<0.000000e+00> : vector<128xf32>
      %20 = vector.multi_reduction <add>, %19, %cst_12 [1] : vector<128x128xf32> to vector<128xf32>
      %21 = vector.shape_cast %20 : vector<128xf32> to vector<128x1xf32>
      %cst_13 = arith.constant 1.280000e+02 : f32
      %22 = vector.broadcast %cst_13 : f32 to vector<128x1xf32>
      %23 = arith.divf %21, %22 : vector<128x1xf32>
      %24 = vector.broadcast %14 : vector<128x1xf32> to vector<128x128xf32>
      %25 = arith.subf %10, %24 : vector<128x128xf32>
      %cst_14 = arith.constant 9.99999996E-13 : f32
      %26 = vector.broadcast %cst_14 : f32 to vector<128x1xf32>
      %27 = arith.addf %23, %26 : vector<128x1xf32>
      %28 = math.rsqrt %27 : vector<128x1xf32>
      %29 = vector.broadcast %28 : vector<128x1xf32> to vector<128x128xf32>
      %30 = arith.mulf %25, %29 : vector<128x128xf32>
      %c0_15 = arith.constant 0 : index
      %c0_16 = arith.constant 0 : index
      %31 = vector.load %arg3[%c0_15, %c0_16] : memref<1x128xf32, #tpu.memory_space<vmem>>, vector<1x128xf32>
      %32 = vector.broadcast %31 : vector<1x128xf32> to vector<128x128xf32>
      %33 = arith.mulf %30, %32 : vector<128x128xf32>
      %c0_17 = arith.constant 0 : index
      %c0_18 = arith.constant 0 : index
      %34 = vector.load %arg4[%c0_17, %c0_18] : memref<1x128xf32, #tpu.memory_space<vmem>>, vector<1x128xf32>
      %35 = vector.broadcast %34 : vector<1x128xf32> to vector<128x128xf32>
      %36 = arith.addf %33, %35 : vector<128x128xf32>
      %c0_19 = arith.constant 0 : index
      %c0_20 = arith.constant 0 : index
      %37 = vector.load %arg8[%c0_19, %c0_20] : memref<128x128xf32, #tpu.memory_space<vmem>>, vector<128x128xf32>
      tpu.vector_store %arg8[%c0_19, %c0_20], %36 {strides = array<i32>} : memref<128x128xf32, #tpu.memory_space<vmem>>, vector<128x128xf32>,
    } else {
    }
    %c0 = arith.constant 0 : index
    %c0_1 = arith.constant 0 : index
    %3 = vector.load %arg8[%c0, %c0_1] : memref<128x128xf32, #tpu.memory_space<vmem>>, vector<128x128xf32>
    %c0_2 = arith.constant 0 : index
    %c0_3 = arith.constant 0 : index
    %4 = vector.load %arg5[%c0_2, %c0_3] : memref<128x128xf32, #tpu.memory_space<vmem>>, vector<128x128xf32>
    %cst = arith.constant dense<0.000000e+00> : vector<128x128xf32>
    %5 = tpu.matmul %3, %4, %cst {dimension_numbers = #tpu.dot_dimension_numbers<[1], [0], [0], [1], [0, 0, 1, 1], [], []>} : vector<128x128xf32>, vector<128x128xf32>, vector<128x128xf32> -> vector<128x128xf32>
    %c0_4 = arith.constant 0 : index
    %c0_5 = arith.constant 0 : index
    %6 = vector.load %arg6[%c0_4, %c0_5] : memref<1x128xf32, #tpu.memory_space<vmem>>, vector<1x128xf32>
    %7 = vector.broadcast %6 : vector<1x128xf32> to vector<128x128xf32>
    %8 = arith.addf %5, %7 : vector<128x128xf32>
    %c0_6 = arith.constant 0 : index
    %c0_7 = arith.constant 0 : index
    %9 = vector.load %arg7[%c0_6, %c0_7] : memref<128x128xf32, #tpu.memory_space<vmem>>, vector<128x128xf32>
    tpu.vector_store %arg7[%c0_6, %c0_7], %8 {strides = array<i32>} : memref<128x128xf32, #tpu.memory_space<vmem>>, vector<128x128xf32>,
    return
  }
  func.func @transform_0(%arg0: i32, %arg1: i32) -> (i32, i32) {
    %c0_i32 = arith.constant 0 : i32
    %c0_i32_0 = arith.constant 0 : i32
    return %arg0, %c0_i32 : i32, i32
  }
  func.func @transform_1(%arg0: i32, %arg1: i32) -> (i32, i32) {
    %c0_i32 = arith.constant 0 : i32
    %c0_i32_0 = arith.constant 0 : i32
    %c0_i32_1 = arith.constant 0 : i32
    return %c0_i32, %c0_i32_0 : i32, i32
  }
  func.func @transform_2(%arg0: i32, %arg1: i32) -> (i32, i32) {
    %c0_i32 = arith.constant 0 : i32
    %c0_i32_0 = arith.constant 0 : i32
    %c0_i32_1 = arith.constant 0 : i32
    return %c0_i32, %c0_i32_0 : i32, i32
  }
  func.func @transform_3(%arg0: i32, %arg1: i32) -> (i32, i32) {
    %c0_i32 = arith.constant 0 : i32
    %c0_i32_0 = arith.constant 0 : i32
    return %c0_i32, %arg1 : i32, i32
  }
  func.func @transform_4(%arg0: i32, %arg1: i32) -> (i32, i32) {
    %c0_i32 = arith.constant 0 : i32
    %c0_i32_0 = arith.constant 0 : i32
    return %c0_i32, %arg1 : i32, i32
  }
  func.func @transform_5(%arg0: i32, %arg1: i32) -> (i32, i32) {
    %c0_i32 = arith.constant 0 : i32
    return %arg0, %arg1 : i32, i32
  }
}

</mosaic_0001>

<bundles_post_ra>
// kernel: tpu_custom_call.1
= control target key start
LH: loop header
LB: loop body
LE: loop exit
PB: predicated region body
PF: predicated region fallthrough
CT: control target
= control target key end

     0   :  { %s2046_s0 = inlined_call_operand.hbm [shape: f32[256,128], index: 0, kind: input, shape index: {}]   ;;  %s2047_s1 = inlined_call_operand.vmem [shape: f32[1,128], index: 1, kind: input, shape index: {}]   ;;  %s2048_s2 = inlined_call_operand.vmem [shape: f32[1,128], index: 2, kind: input, shape index: {}]   ;;  %s2049_s3 = inlined_call_operand.hbm [shape: f32[128,896], index: 3, kind: input, shape index: {}]   ;;  %s2050_s4 = inlined_call_operand.vmem [shape: f32[1,896], index: 4, kind: input, shape index: {}]   ;;  %s2051_s5 = inlined_call_operand.hbm [shape: f32[256,896], index: 5, kind: output, shape index: {}]  }
   0x1   :  { %2065 = sst [smem:[#allocation18_spill]] %s2046_s0 }
   0x2   :  { %2066 = sst [smem:[#allocation19_spill]] %s2047_s1 }
   0x3   :  { %2067 = sst [smem:[#allocation20_spill]] %s2048_s2 }
   0x4   :  { %2068 = sst [smem:[#allocation21_spill]] %s2050_s4 }
   0x5   :  { %2069 = sst [smem:[#allocation22_spill]] %s2051_s5 }
   0x6   :  { %10 = vsyncpa [#allocation4], 0 }
   0x7   :  { %12 = vsyncpa [#allocation4 + $0x1], 0 }
   0x8   :  { %13 = vsyncpa [#allocation7], 0 }
   0x9   :  { %15 = vsyncpa [#allocation7 + $0x1], 0 }
   0xa   :  { %16 = vsyncpa [#allocation5], 0 }
   0xb   :  { %18 = vsyncpa [#allocation5 + $0x1], 0  ;;  %s1486_s18 = smov 0   ;;  %s1488_s19 = smov 0  }
   0xc   :  { %s1490_s20 = smov 0   ;;  %s1492_s21 = smov 0  }
   0xd   :  { %s1494_s22 = smov 0   ;;  %s1496_s23 = smov 0  }
   0xe   :  { %s1498_s24 = smov 0   ;;  %s1500_s25 = smov 0  }
   0xf   :  { %s1502_s26 = smov 0   ;;  %s1504_s27 = smov 0  }
  0x10   :  { %s1506_s28 = smov 0   ;;  %s1508_s29 = smov 0  }
  0x11   :  { %s1510_s30 = smov 0   ;;  %s1512_s6 = smov 0  }
  0x12 LB: > { %2070 = sst [smem:[#allocation12_spill]] %s1433_s28  ;;  %s905_s7 = sadd.s32 4294967295, %s1445_s6   ;;  %s1445_s6 = sphi %s1512_s6, %s24_s6   ;;  %s1441_s30 = sphi %s1510_s30, %s2110_s30   ;;  %s1437_s29 = sphi %s1508_s29, %s2121_s29   ;;  %s1433_s28 = sphi %s1506_s28, %s2108_s28   ;;  %s1429_s27 = sphi %s1504_s27, %s2120_s27   ;;  %s1425_s26 = sphi %s1502_s26, %s2119_s26   ;;  %s1421_s25 = sphi %s1500_s25, %s2118_s25   ;;  %s1417_s24 = sphi %s1498_s24, %s2117_s24   ;;  %s1413_s23 = sphi %s1496_s23, %s2116_s23   ;;  %s1409_s22 = sphi %s1494_s22, %s2115_s22   ;;  %s1405_s21 = sphi %s1492_s21, %s2114_s21   ;;  %s1401_s20 = sphi %s1490_s20, %s2113_s20   ;;  %s1397_s19 = sphi %s1488_s19, %s2112_s19   ;;  %s1393_s18 = sphi %s1486_s18, %s2111_s18  }
  0x13   : > { %2071 = sst [smem:[#allocation13_spill]] %s1441_s30  ;;  %p50_p0 = scmp.ne.s32.totalorder %s1425_s26, %s1421_s25 }
  0x14   : > { %p2054_p1 = scmp.eq.s32.totalorder %s1445_s6, 0  ;;  %p56_p2 = scmp.ne.s32.totalorder %s1421_s25, %s1417_s24 }
  0x15   : > { %p1561_p3 = scmp.eq.s32.totalorder %s905_s7, 0  ;;  %p1565_p4 = scmp.eq.s32.totalorder %s905_s7, 13 }
  0x16   : > { %p52_p5 = por %p2054_p1, %p50_p0  ;;  %p2053_p7 = scmp.lt.s32.totalorder %s1445_s6, 14 }
  0x17   : > { %s2073_s11 = scalar_select %p1565_p4, 1, 0 }
  0x18   : > { %p1573_p6 = por %p1561_p3, %p56_p2  ;;  %s208_s13 = sand.u32 1, %s1425_s26  }
  0x19   : > { %s928_s14 = sshll.u32 %s1441_s30, 11  ;;  %s909_s15 = sshll.u32 %s208_s13, 7 }
  0x1a   : > { %s2074_s12 = scalar_select %p1573_p6, 1, 0 }
  0x1b   : > { %s2075_s0 = sld [smem:[#allocation18_spill]]  ;;  %s212_s7 = scalar_lea.vmem [#allocation3], %s909_s15 }
  0x1c   : > { %s219_s9 = sshll.u32 %s212_s7, 4  ;;  %p1587_p8 = pnand %p2053_p7, %p52_p5  ;;  %s1591_s9 = int_to_ptr.vmem [resolvable:$true] %s219_s9 }
  0x1d   : > { %s1593_s5 = scalar_lea.sflag [#allocation4], %s208_s13 }
  0x1e   : > { %p1237_p10 = pneg %p1587_p8 }
  0x21   : > { %s1583_s24 = scalar_lea.hbm %s2075_s0, %s928_s14  ;;  %s1240_s17 = scalar_lea.hbm %s2075_s0, 4096 }
  0x22   : > { %s1235_s16 = scalar_lea.hbm %s1583_s24, 2048  ;;  %p1241_p13 = scmp.lt.u32.totalorder %s1583_s24, %s2075_s0 }
  0x23   : > { %p1236_p9 = scmp.ne.s32.totalorder %s1583_s24, %s1235_s16  ;;  %p1242_p0 = scmp.lt.u32.totalorder %s1240_s17, %s1235_s16 }
  0x24   : > { %p1244_p5 = scmp.lt.u32.totalorder %s1235_s16, %s1583_s24 }
  0x25   : > { %p1238_p11 = pnand %p1237_p10, %p1236_p9  ;;  %p1243_p2 = por %p1242_p0, %p1241_p13 }
  0x27   : > { %p1239_p12 = pneg %p1238_p11  ;;  %p1245_p7 = por %p1244_p5, %p1243_p2 }
  0x29   : > { %p1246_p1 = pnand %p1245_p7, %p1239_p12 }
  0x2b   : > { %1249 = shalt.err (!%p1246_p1)
}
  0x2c   : > { %s1250_s13 = scalar_lea.vmem %s1591_s9, 2048  ;;  %s1447_s14 = smov [#allocation3]  }
  0x2d   : > { %p1251_p9 = scmp.ne.s32.totalorder %s1591_s9, %s1250_s13  ;;  %s1255_s15 = sshll.u32 %s1447_s14, 4  ;;  %s1256_s15 = int_to_ptr.vmem [resolvable:$false] %s1255_s15 }
  0x2e   : > { %s1257_s28 = scalar_lea.vmem %s1256_s15, 4096  ;;  %p1258_p4 = scmp.lt.s32.totalorder %s1591_s9, %s1256_s15 }
  0x2f   : > { %p1253_p11 = pnand %p1251_p9, %p1237_p10  ;;  %p1259_p13 = scmp.lt.s32.totalorder %s1257_s28, %s1250_s13 }
  0x31   : > { %p1254_p6 = pneg %p1253_p11  ;;  %p1260_p0 = por %p1259_p13, %p1258_p4 }
  0x33   : > { %p1261_p2 = pnand %p1260_p0, %p1254_p6 }
  0x35   : > { %1264 = shalt.err (!%p1261_p2)
}
  0x36   : > { %s2056_s16 = smov 128   ;;  %s2057_s17 = smov 8  }
  0x37   : > { %1075 = dma.hbm_to_vmem [thread:$0]  (!%p1587_p8), %s1583_s24, 2048, %s1591_s9, %s1593_s5, %s2056_s16, %s2056_s16, %s2057_s17  }
  0x38   : > { %p914_p1 = scmp.ge.s32.totalorder %s1445_s6, 1  ;;  %p253_p4 = scmp.lt.s32.totalorder %s1445_s6, 15 }
  0x39   : > { %s906_s13 = sadd.s32 4294967294, %s1445_s6   ;;  %s33_s14 = sadd.s32 1, %s1437_s29 }
  0x3a   : > { %p1626_p6 = pnand %p914_p1, %p253_p4  ;;  %s111_s15 = sadd.s32 1, %s1413_s23 }
  0x3b   : > { %p34_p7 = scmp.ge.s32.totalorder %s33_s14, 7  ;;  %p118_p10 = scmp.ne.s32.totalorder %s1413_s23, %s1409_s22 }
  0x3c   : > { %p124_p12 = scmp.ne.s32.totalorder %s1409_s22, %s1405_s21  ;;  %s165_s8 = sadd.s32 1, %s1401_s20 }
  0x3d   : > { %s2123_s14 = smov (%p34_p7, %s33_s14), 0  ;;  %s2079_s5 = sadd.s32 1, %s1441_s30 }
  0x3e   : > { %2078 = sst [smem:[#allocation14_spill]] %s2123_s14  ;;  %s2125_s5 = smov (!%p34_p7, %s2079_s5), %s1441_s30 }
  0x3f   : > { %s108_s9 = ssub.s32 %s1437_s29, %s2123_s14  ;;  %p2080_p8 = scmp.eq.s32.totalorder %s1445_s6, 0 }
  0x40   : > { %p38_p9 = scmp.ge.s32.totalorder %s2125_s5, 2  ;;  %p109_p11 = scmp.eq.s32.totalorder %s108_s9, 0 }
  0x41   : > { %p1647_p5 = por %p118_p10, %p2080_p8  ;;  %p1653_p13 = por %p124_p12, %p1561_p3 }
  0x42   : > { %p175_p0 = scmp.ne.s32.totalorder %s1401_s20, %s1397_s19  ;;  %s2127_s5 = smov (%p38_p9, %s2125_s5), 0 }
  0x43   : > { %s2082_s21 = scalar_select %p1653_p13, 1, 0 }
  0x44   : > { %2083 = sst [smem:[#allocation15_spill]] %s2127_s5  ;;  %s40_s16 = ssub.s32 %s1441_s30, %s2127_s5 }
  0x45   : > { %s1662_s28 = scalar_select %p109_p11, %s1413_s23, %s111_s15  }
  0x46   : > { %p2085_p2 = scmp.ne.s32.totalorder %s2073_s11, 0  ;;  %p41_p4 = scmp.eq.s32.totalorder %s40_s16, 0 }
  0x47   : > { %2084 = sst [smem:[#allocation16_spill]] %s1662_s28  ;;  %s162_s10 = sor.u32 %s108_s9, %s40_s16 }
  0x48   : > { %p1668_p1 = por %p2085_p2, %p175_p0  ;;  %p163_p3 = scmp.eq.s32.totalorder %s162_s10, 0 }
  0x49   : > { %p181_p7 = scmp.ne.s32.totalorder %s1397_s19, %s1393_s18  ;;  %s2088_s0 = sadd.s32 1, %s1425_s26 }
  0x4a   : > { %s2086_s17 = scalar_select %p1668_p1, 1, 0 }
  0x4b   : > { %s1677_s14 = scalar_select %p41_p4, %s1425_s26, %s2088_s0  }
  0x4c   : > { %2087 = sst [smem:[#allocation17_spill]] %s2086_s17  ;;  %p182_p10 = scmp.eq.s32.totalorder %s906_s13, 13 }
  0x4d   : > { %s1680_s2 = scalar_select %p163_p3, %s1401_s20, %s165_s8  }
  0x4e   : > { %s229_s15 = sand.u32 1, %s1413_s23   ;;  %p1683_p12 = por %p182_p10, %p181_p7 }
  0x4f   : > { %s912_s28 = sshll.u32 %s229_s15, 7  ;;  %s913_s5 = sshll.u32 %s1437_s29, 7 }
  0x50   : > { %s2089_s11 = scalar_select %p1683_p12, 1, 0 }
  0x51   : > { %s233_s30 = scalar_lea.vmem [#allocation6], %s912_s28  ;;  %s1691_s16 = scalar_lea.hbm %s2049_s3, %s913_s5 }
  0x52   : > { %s239_s17 = sshll.u32 %s233_s30, 4  ;;  %p2090_p8 = scmp.lt.s32.totalorder %s1445_s6, 14  ;;  %s1693_s17 = int_to_ptr.vmem [resolvable:$true] %s239_s17 }
  0x53   : > { %s1703_s30 = scalar_lea.sflag [#allocation7], %s229_s15  ;;  %s1265_s13 = scalar_lea.hbm %s1691_s16, 2048 }
  0x54   : > { %p1699_p9 = pnand %p2090_p8, %p1647_p5  ;;  %p1266_p11 = scmp.ne.s32.totalorder %s1691_s16, %s1265_s13 }
  0x55   : > { %s1270_s8 = scalar_lea.hbm %s2049_s3, 14336  ;;  %p1271_p5 = scmp.lt.u32.totalorder %s1691_s16, %s2049_s3 }
  0x56   : > { %p1267_p0 = pneg %p1699_p9  ;;  %p1272_p3 = scmp.lt.u32.totalorder %s1270_s8, %s1265_s13 }
  0x57   : > { %p1274_p10 = scmp.lt.u32.totalorder %s1265_s13, %s1691_s16 }
  0x58   : > { %p1268_p2 = pnand %p1267_p0, %p1266_p11  ;;  %p1273_p7 = por %p1272_p3, %p1271_p5 }
  0x5a   : > { %p1269_p4 = pneg %p1268_p2  ;;  %p1275_p8 = por %p1274_p10, %p1273_p7 }
  0x5c   : > { %p1276_p12 = pnand %p1275_p8, %p1269_p4 }
  0x5e   : > { %1279 = shalt.err (!%p1276_p12)
}
  0x5f   : > { %s1280_s24 = scalar_lea.vmem %s1693_s17, 2048  ;;  %s1450_s28 = smov [#allocation6]  }
  0x60   : > { %p1281_p11 = scmp.ne.s32.totalorder %s1693_s17, %s1280_s24  ;;  %s1285_s10 = sshll.u32 %s1450_s28, 4  ;;  %s1286_s10 = int_to_ptr.vmem [resolvable:$false] %s1285_s10 }
  0x61   : > { %s1287_s15 = scalar_lea.vmem %s1286_s10, 4096  ;;  %p1288_p13 = scmp.lt.s32.totalorder %s1693_s17, %s1286_s10 }
  0x62   : > { %p1283_p2 = pnand %p1281_p11, %p1267_p0  ;;  %p1289_p5 = scmp.lt.s32.totalorder %s1287_s15, %s1280_s24 }
  0x64   : > { %p1284_p1 = pneg %p1283_p2  ;;  %p1290_p3 = por %p1289_p5, %p1288_p13 }
  0x66   : > { %p1291_p7 = pnand %p1290_p3, %p1284_p1 }
  0x68   : > { %1294 = shalt.err (!%p1291_p7)
}
  0x69   : > { %s1451_s13 = smov 896   ;;  %s2092_s1 = smov 8  }
  0x6a   : > { %s2093_s4 = smov 128   ;;  %257 = sbr.rel (%p1626_p6) target bundleno = 745 (0x2e9), region = 40 }
  0x6b   : > { %1078 = dma.hbm_to_vmem [thread:$0]  (!%p1699_p9), %s1691_s16, 2048, %s1693_s17, %s1703_s30, %s1451_s13, %s2093_s4, %s2092_s1  }
  0x6c   : > { %s259_s8 = sand.u32 (!%p1626_p6), 1, %s1421_s25   ;;  %p2094_p13 = scmp.ne.s32.totalorder (!%p1626_p6), %s2074_s12, 0 }
  0x6d   : > { %s915_s5 = sshll.u32 (!%p1626_p6), %s259_s8, 7  ;;  %s260_s9 = scalar_lea.sflag (!%p1626_p6), [#allocation4], %s259_s8 }
  0x6e   : > { %s1736_s24 = scalar_lea.vmem (!%p1626_p6), [#allocation3], %s915_s5 }
  0x71   : > { %1380 = dma.done.wait (%p2094_p13), %s260_s9, 2048  }
  0x72   : > { %1382 = vsyncadd (%p2094_p13), %s260_s9, 4294965248  ;;  %s268_s0 = sand.u32 1, %s1409_s22   ;;  %p2095_p6 = scmp.ne.s32.totalorder %s2082_s21, 0 }
  0x73   : > { %s916_s28 = sshll.u32 %s268_s0, 7  ;;  %s269_s17 = scalar_lea.sflag [#allocation7], %s268_s0 }
  0x74   : > { %s1743_s16 = scalar_lea.vmem [#allocation6], %s916_s28 }
  0x75   : > { %1384 = dma.done.wait (%p2095_p6), %s269_s17, 2048  }
  0x76   : > { %1386 = vsyncadd (%p2095_p6), %s269_s17, 4294965248  ;;  %s304_s7 = sand.u32 1, %s1397_s19   ;;  %p308_p1 = scmp.lt.s32.totalorder %s1429_s27, 6 }
  0x77   : > { %s917_s12 = sshll.u32 %s304_s7, 7  ;;  %s2096_s13 = sld [smem:[#allocation21_spill]] }
  0x78   : > { %s1754_s30 = scalar_select %p308_p1, %s1429_s27, 6 }
  0x79   : > { %s1760_s4 = scalar_lea.vmem [#allocation8], %s917_s12  ;;  %p918_p12 = scmp.ne.s32.totalorder %s1429_s27, 0 }
  0x7a   : > { %v316_v0 = vld [vmem:[%s1736_s24] sm:$0xff] (!%p918_p12)  ;;  %v318_v1 = vld [vmem:[%s1736_s24 + $0x10] sm:$0xff] (!%p918_p12)  ;;  %v317_v2 = vld [vmem:[%s1736_s24 + $0x8] sm:$0xff] (!%p918_p12)  ;;  %s2097_s5 = sld [smem:[#allocation19_spill]] (!%p918_p12)  ;;  %s2098_s0 = sld [smem:[#allocation20_spill]] (!%p918_p12) }
  0x7b   : > { %315 = sbr.rel (%p918_p12) target bundleno = 467 (0x1d3), region = 52  ;;  %332 = vadd.xlane.f32.xlu0 (!%p918_p12), %v316_v0  ;;  %336 = vadd.xlane.f32.xlu1 (!%p918_p12), %v318_v1  ;;  %v319_v3 = vld [vmem:[%s1736_s24 + $0x18] sm:$0xff] (!%p918_p12)  ;;  %v320_v4 = vld [vmem:[%s1736_s24 + $0x20] sm:$0xff] (!%p918_p12)  ;;  %v321_v5 = vld [vmem:[%s1736_s24 + $0x28] sm:$0xff] (!%p918_p12) }
  0x7c   : > { %v322_v6 = vld [vmem:[%s1736_s24 + $0x30] sm:$0xff] (!%p918_p12)  ;;  %v323_v7 = vld [vmem:[%s1736_s24 + $0x38] sm:$0xff] (!%p918_p12)  ;;  %v324_v8 = vld [vmem:[%s1736_s24 + $0x40] sm:$0xff] (!%p918_p12) }
  0x7d   : > { %s310_s1 = scalar_lea.vmem %s2096_s13, %s1754_s30  ;;  %v325_v9 = vld [vmem:[%s1736_s24 + $0x48] sm:$0xff] (!%p918_p12)  ;;  %v326_v10 = vld [vmem:[%s1736_s24 + $0x50] sm:$0xff] (!%p918_p12)  ;;  %v1775_v11 = vld [vmem:[%s1736_s24 + $0x58] sm:$0xff] (!%p918_p12) }
  0x7e   : > { %v1779_v12 = vld [vmem:[%s1736_s24 + $0x60] sm:$0xff] (!%p918_p12)  ;;  %v1782_v13 = vld [vmem:[%s1736_s24 + $0x68] sm:$0xff] (!%p918_p12)  ;;  %v1787_v14 = vld [vmem:[%s1736_s24 + $0x70] sm:$0xff] (!%p918_p12) }
  0x7f   : > { %334 = vadd.xlane.f32.xlu0 (!%p918_p12), %v317_v2  ;;  %338 = vadd.xlane.f32.xlu1 (!%p918_p12), %v319_v3  ;;  %v1790_v15 = vld [vmem:[%s1736_s24 + $0x78] sm:$0xff] (!%p918_p12) }
  0x83   : > { %340 = vadd.xlane.f32.xlu0 %v320_v4  ;;  %342 = vadd.xlane.f32.xlu1 %v321_v5 }
  0x87   : > { %344 = vadd.xlane.f32.xlu0 %v322_v6  ;;  %346 = vadd.xlane.f32.xlu1 %v323_v7 }
  0x8b   : > { %348 = vadd.xlane.f32.xlu0 %v324_v8  ;;  %350 = vadd.xlane.f32.xlu1 %v325_v9 }
  0x8f   : > { %352 = vadd.xlane.f32.xlu0 %v326_v10  ;;  %354 = vadd.xlane.f32.xlu1 %v1775_v11 }
  0x93   : > { %356 = vadd.xlane.f32.xlu0 %v1779_v12  ;;  %358 = vadd.xlane.f32.xlu1 %v1782_v13 }
  0x97   : > { %360 = vadd.xlane.f32.xlu0 %v1787_v14  ;;  %362 = vadd.xlane.f32.xlu1 %v1790_v15 }
 0x108   : > { %v333_v16 = vpop.xlane.xlu0 %332  ;;  %v337_v17 = vpop.xlane.xlu1 %336 }
 0x109   : > { %v365_v18 = vmul.f32 0.0078125, %v333_v16  ;;  %v367_v19 = vmul.f32 0.0078125, %v337_v17 }
 0x10b   : > { %v1794_v20 = vsub.f32 %v316_v0, %v365_v18  ;;  %v1796_v21 = vsub.f32 %v318_v1, %v367_v19 }
 0x10c   : > { %v335_v22 = vpop.xlane.xlu0 %334  ;;  %v339_v23 = vpop.xlane.xlu1 %338 }
 0x10d   : > { %v366_v24 = vmul.f32 0.0078125, %v335_v22  ;;  %v397_v25 = vmul.f32 %v1794_v20, %v1794_v20  ;;  %v368_v26 = vmul.f32 0.0078125, %v339_v23  ;;  %v399_v29 = vmul.f32 %v1796_v21, %v1796_v21 }
 0x10f   : > { %v1800_v27 = vsub.f32 %v317_v2, %v366_v24  ;;  %413 = vadd.xlane.f32.xlu0 %v397_v25  ;;  %v1802_v28 = vsub.f32 %v319_v3, %v368_v26 }
 0x110   : > { %v341_v30 = vpop.xlane.xlu0 %340  ;;  %v343_v31 = vpop.xlane.xlu1 %342 }
 0x111   : > { %v369_v32 = vmul.f32 0.0078125, %v341_v30  ;;  %v398_v33 = vmul.f32 %v1800_v27, %v1800_v27  ;;  %v370_v34 = vmul.f32 0.0078125, %v343_v31  ;;  %v400_v37 = vmul.f32 %v1802_v28, %v1802_v28 }
 0x113   : > { %v1808_v35 = vsub.f32 %v320_v4, %v369_v32  ;;  %417 = vadd.xlane.f32.xlu0 %v399_v29  ;;  %415 = vadd.xlane.f32.xlu1 %v398_v33  ;;  %v1810_v36 = vsub.f32 %v321_v5, %v370_v34 }
 0x114   : > { %v345_v38 = vpop.xlane.xlu0 %344  ;;  %v347_v39 = vpop.xlane.xlu1 %346 }
 0x115   : > { %v371_v40 = vmul.f32 0.0078125, %v345_v38  ;;  %v401_v41 = vmul.f32 %v1808_v35, %v1808_v35  ;;  %v372_v42 = vmul.f32 0.0078125, %v347_v39  ;;  %v402_v45 = vmul.f32 %v1810_v36, %v1810_v36 }
 0x117   : > { %v1816_v43 = vsub.f32 %v322_v6, %v371_v40  ;;  %419 = vadd.xlane.f32.xlu1 %v400_v37  ;;  %421 = vadd.xlane.f32.xlu0 %v401_v41  ;;  %v1818_v44 = vsub.f32 %v323_v7, %v372_v42  ;;  %v1866_v42 = vld [vmem:[%s2097_s5] ss:$0 sm:$0xff] }
 0x118   : > { %v349_v46 = vpop.xlane.xlu0 %348  ;;  %v351_v47 = vpop.xlane.xlu1 %350 }
 0x119   : > { %v373_v48 = vmul.f32 0.0078125, %v349_v46  ;;  %v403_v49 = vmul.f32 %v1816_v43, %v1816_v43  ;;  %v374_v50 = vmul.f32 0.0078125, %v351_v47  ;;  %v404_v53 = vmul.f32 %v1818_v44, %v1818_v44 }
 0x11b   : > { %v1824_v51 = vsub.f32 %v324_v8, %v373_v48  ;;  %423 = vadd.xlane.f32.xlu1 %v402_v45  ;;  %425 = vadd.xlane.f32.xlu0 %v403_v49  ;;  %v1826_v52 = vsub.f32 %v325_v9, %v374_v50  ;;  %v1872_v50 = vld [vmem:[%s2098_s0] ss:$0 sm:$0xff] }
 0x11c   : > { %v353_v54 = vpop.xlane.xlu0 %352  ;;  %v355_v55 = vpop.xlane.xlu1 %354 }
 0x11d   : > { %v375_v56 = vmul.f32 0.0078125, %v353_v54  ;;  %v405_v57 = vmul.f32 %v1824_v51, %v1824_v51  ;;  %v376_v58 = vmul.f32 0.0078125, %v355_v55  ;;  %v406_v61 = vmul.f32 %v1826_v52, %v1826_v52 }
 0x11f   : > { %v1832_v59 = vsub.f32 %v326_v10, %v375_v56  ;;  %427 = vadd.xlane.f32.xlu1 %v404_v53  ;;  %429 = vadd.xlane.f32.xlu0 %v405_v57  ;;  %v1835_v60 = vsub.f32 %v1775_v11, %v376_v58 }
 0x120   : > { %v357_v62 = vpop.xlane.xlu0 %356  ;;  %v359_v63 = vpop.xlane.xlu1 %358 }
 0x121   : > { %v377_v0 = vmul.f32 0.0078125, %v357_v62  ;;  %v407_v1 = vmul.f32 %v1832_v59, %v1832_v59  ;;  %v378_v2 = vmul.f32 0.0078125, %v359_v63  ;;  %v408_v5 = vmul.f32 %v1835_v60, %v1835_v60 }
 0x123   : > { %v1842_v3 = vsub.f32 %v1779_v12, %v377_v0  ;;  %431 = vadd.xlane.f32.xlu1 %v406_v61  ;;  %433 = vadd.xlane.f32.xlu0 %v407_v1  ;;  %v1845_v4 = vsub.f32 %v1782_v13, %v378_v2 }
 0x124   : > { %v361_v6 = vpop.xlane.xlu0 %360  ;;  %v363_v7 = vpop.xlane.xlu1 %362 }
 0x125   : > { %v379_v8 = vmul.f32 0.0078125, %v361_v6  ;;  %v409_v9 = vmul.f32 %v1842_v3, %v1842_v3  ;;  %v380_v10 = vmul.f32 0.0078125, %v363_v7  ;;  %v410_v13 = vmul.f32 %v1845_v4, %v1845_v4 }
 0x127   : > { %v1852_v11 = vsub.f32 %v1787_v14, %v379_v8  ;;  %435 = vadd.xlane.f32.xlu1 %v408_v5  ;;  %437 = vadd.xlane.f32.xlu0 %v409_v9  ;;  %v1855_v12 = vsub.f32 %v1790_v15, %v380_v10 }
 0x129   : > { %v411_v16 = vmul.f32 %v1852_v11, %v1852_v11  ;;  %v412_v17 = vmul.f32 %v1855_v12, %v1855_v12 }
 0x12b   : > { %439 = vadd.xlane.f32.xlu1 %v410_v13  ;;  %441 = vadd.xlane.f32.xlu0 %v411_v16 }
 0x12f   : > { %443 = vadd.xlane.f32.xlu1 %v412_v17 }
 0x19c   : > { %v414_v18 = vpop.xlane.xlu0 %413 }
 0x19d   : > { %v445_v14 = vmul.f32 0.0078125, %v414_v18 }
 0x19f   : > { %v461_v19 = vadd.f32 1e-12, %v445_v14 }
 0x1a0   : > { %v416_v22 = vpop.xlane.xlu1 %415  ;;  %v418_v23 = vpop.xlane.xlu0 %417 }
 0x1a1   : > { %1203 = vrsqrt.f32 %v461_v19  ;;  %v446_v15 = vmul.f32 0.0078125, %v416_v22  ;;  %v447_v24 = vmul.f32 0.0078125, %v418_v23 }
 0x1a3   : > { %v462_v25 = vadd.f32 1e-12, %v446_v15  ;;  %v463_v26 = vadd.f32 1e-12, %v447_v24 }
 0x1a4   : > { %v420_v29 = vpop.xlane.xlu1 %419  ;;  %v422_v30 = vpop.xlane.xlu0 %421 }
 0x1a5   : > { %1205 = vrsqrt.f32 %v462_v25  ;;  %v448_v31 = vmul.f32 0.0078125, %v420_v29  ;;  %v449_v32 = vmul.f32 0.0078125, %v422_v30 }
 0x1a6   : > { %1207 = vrsqrt.f32 %v463_v26 }
 0x1a7   : > { %v464_v33 = vadd.f32 1e-12, %v448_v31  ;;  %v465_v34 = vadd.f32 1e-12, %v449_v32 }
 0x1a8   : > { %v424_v37 = vpop.xlane.xlu1 %423  ;;  %v426_v38 = vpop.xlane.xlu0 %425 }
 0x1a9   : > { %1209 = vrsqrt.f32 %v464_v33  ;;  %v450_v39 = vmul.f32 0.0078125, %v424_v37  ;;  %v451_v40 = vmul.f32 0.0078125, %v426_v38 }
 0x1aa   : > { %1211 = vrsqrt.f32 %v465_v34 }
 0x1ab   : > { %v1204_v41 = vpop.eup %1203  ;;  %v466_v45 = vadd.f32 1e-12, %v450_v39  ;;  %v467_v46 = vadd.f32 1e-12, %v451_v40 }
 0x1ac   : > { %v493_v47 = vmul.f32 %v1204_v41, %v1794_v20  ;;  %v428_v48 = vpop.xlane.xlu1 %427  ;;  %v430_v49 = vpop.xlane.xlu0 %429 }
 0x1ad   : > { %1213 = vrsqrt.f32 %v466_v45  ;;  %v452_v53 = vmul.f32 0.0078125, %v428_v48  ;;  %v453_v54 = vmul.f32 0.0078125, %v430_v49 }
 0x1ae   : > { %v516_v55 = vmul.f32 %v1866_v42, %v493_v47  ;;  %1215 = vrsqrt.f32 %v467_v46 }
 0x1af   : > { %v1206_v56 = vpop.eup %1205  ;;  %v468_v57 = vadd.f32 1e-12, %v452_v53  ;;  %v469_v58 = vadd.f32 1e-12, %v453_v54 }
 0x1b0   : > { %v1208_v61 = vpop.eup %1207  ;;  %v539_v62 = vadd.f32 %v1872_v50, %v516_v55  ;;  %v494_v20 = vmul.f32 %v1206_v56, %v1800_v27  ;;  %v432_v63 = vpop.xlane.xlu1 %431 }
 0x1b1   : > { %v434_v0 = vpop.xlane.xlu0 %433  ;;  %v495_v1 = vmul.f32 %v1208_v61, %v1796_v21  ;;  %1217 = vrsqrt.f32 %v468_v57  ;;  %v454_v2 = vmul.f32 0.0078125, %v432_v63 }
 0x1b2   : > { %v455_v5 = vmul.f32 0.0078125, %v434_v0  ;;  %555 = vst [vmem:[#allocation2] sm:$0xff] %v539_v62  ;;  %v517_v6 = vmul.f32 %v1866_v42, %v494_v20  ;;  %1219 = vrsqrt.f32 %v469_v58 }
 0x1b3   : > { %v1210_v7 = vpop.eup %1209  ;;  %v518_v8 = vmul.f32 %v1866_v42, %v495_v1  ;;  %v470_v9 = vadd.f32 1e-12, %v454_v2 }
 0x1b4   : > { %v471_v10 = vadd.f32 1e-12, %v455_v5  ;;  %v1212_v13 = vpop.eup %1211  ;;  %v540_v16 = vadd.f32 %v1872_v50, %v517_v6  ;;  %v496_v27 = vmul.f32 %v1210_v7, %v1802_v28  ;;  %v436_v17 = vpop.xlane.xlu1 %435 }
 0x1b5   : > { %v438_v18 = vpop.xlane.xlu0 %437  ;;  %v541_v21 = vadd.f32 %v1872_v50, %v518_v8  ;;  %v497_v14 = vmul.f32 %v1212_v13, %v1808_v35  ;;  %1221 = vrsqrt.f32 %v470_v9  ;;  %v456_v19 = vmul.f32 0.0078125, %v436_v17 }
 0x1b6   : > { %556 = vst [vmem:[#allocation2 + $0x8] sm:$0xff] %v540_v16  ;;  %v519_v22 = vmul.f32 %v1866_v42, %v496_v27  ;;  %1223 = vrsqrt.f32 %v471_v10  ;;  %v457_v23 = vmul.f32 0.0078125, %v438_v18 }
 0x1b7   : > { %v1214_v15 = vpop.eup %1213  ;;  %557 = vst [vmem:[#allocation2 + $0x10] sm:$0xff] %v541_v21  ;;  %v520_v24 = vmul.f32 %v1866_v42, %v497_v14  ;;  %v472_v25 = vadd.f32 1e-12, %v456_v19 }
 0x1b8   : > { %v1216_v26 = vpop.eup %1215  ;;  %v542_v28 = vadd.f32 %v1872_v50, %v519_v22  ;;  %v498_v29 = vmul.f32 %v1214_v15, %v1810_v36  ;;  %v473_v30 = vadd.f32 1e-12, %v457_v23  ;;  %v440_v31 = vpop.xlane.xlu1 %439 }
 0x1b9   : > { %v442_v35 = vpop.xlane.xlu0 %441  ;;  %v543_v32 = vadd.f32 %v1872_v50, %v520_v24  ;;  %v499_v33 = vmul.f32 %v1216_v26, %v1816_v43  ;;  %1225 = vrsqrt.f32 %v472_v25  ;;  %v458_v34 = vmul.f32 0.0078125, %v440_v31 }
 0x1ba   : > { %558 = vst [vmem:[#allocation2 + $0x18] sm:$0xff] %v542_v28  ;;  %v521_v37 = vmul.f32 %v1866_v42, %v498_v29  ;;  %1227 = vrsqrt.f32 %v473_v30  ;;  %v459_v38 = vmul.f32 0.0078125, %v442_v35 }
 0x1bb   : > { %v1218_v39 = vpop.eup %1217  ;;  %559 = vst [vmem:[#allocation2 + $0x20] sm:$0xff] %v543_v32  ;;  %v522_v40 = vmul.f32 %v1866_v42, %v499_v33  ;;  %v474_v41 = vadd.f32 1e-12, %v458_v34 }
 0x1bc   : > { %v1220_v36 = vpop.eup %1219  ;;  %v544_v45 = vadd.f32 %v1872_v50, %v521_v37  ;;  %v500_v46 = vmul.f32 %v1218_v39, %v1818_v44  ;;  %v475_v47 = vadd.f32 1e-12, %v459_v38  ;;  %v444_v48 = vpop.xlane.xlu1 %443 }
 0x1bd   : > { %v545_v43 = vadd.f32 %v1872_v50, %v522_v40  ;;  %v501_v49 = vmul.f32 %v1220_v36, %v1824_v51  ;;  %1229 = vrsqrt.f32 %v474_v41  ;;  %v460_v53 = vmul.f32 0.0078125, %v444_v48 }
 0x1be   : > { %560 = vst [vmem:[#allocation2 + $0x28] sm:$0xff] %v544_v45  ;;  %v523_v54 = vmul.f32 %v1866_v42, %v500_v46  ;;  %1231 = vrsqrt.f32 %v475_v47 }
 0x1bf   : > { %v1222_v55 = vpop.eup %1221  ;;  %561 = vst [vmem:[#allocation2 + $0x30] sm:$0xff] %v545_v43  ;;  %v524_v56 = vmul.f32 %v1866_v42, %v501_v49  ;;  %v476_v57 = vadd.f32 1e-12, %v460_v53 }
 0x1c0   : > { %v1224_v58 = vpop.eup %1223  ;;  %v546_v44 = vadd.f32 %v1872_v50, %v523_v54  ;;  %v502_v61 = vmul.f32 %v1222_v55, %v1826_v52 }
 0x1c1   : > { %v547_v62 = vadd.f32 %v1872_v50, %v524_v56  ;;  %v503_v51 = vmul.f32 %v1224_v58, %v1832_v59  ;;  %1233 = vrsqrt.f32 %v476_v57 }
 0x1c2   : > { %562 = vst [vmem:[#allocation2 + $0x38] sm:$0xff] %v546_v44  ;;  %v525_v20 = vmul.f32 %v1866_v42, %v502_v61 }
 0x1c3   : > { %v1226_v63 = vpop.eup %1225  ;;  %563 = vst [vmem:[#allocation2 + $0x40] sm:$0xff] %v547_v62  ;;  %v526_v0 = vmul.f32 %v1866_v42, %v503_v51 }
 0x1c4   : > { %v1228_v1 = vpop.eup %1227  ;;  %v548_v2 = vadd.f32 %v1872_v50, %v525_v20  ;;  %v504_v5 = vmul.f32 %v1226_v63, %v1835_v60 }
 0x1c5   : > { %v549_v6 = vadd.f32 %v1872_v50, %v526_v0  ;;  %v505_v52 = vmul.f32 %v1228_v1, %v1842_v3 }
 0x1c6   : > { %564 = vst [vmem:[#allocation2 + $0x48] sm:$0xff] %v548_v2  ;;  %v527_v59 = vmul.f32 %v1866_v42, %v504_v5 }
 0x1c7   : > { %v1230_v7 = vpop.eup %1229  ;;  %565 = vst [vmem:[#allocation2 + $0x50] sm:$0xff] %v549_v6  ;;  %v528_v8 = vmul.f32 %v1866_v42, %v505_v52 }
 0x1c8   : > { %v1232_v9 = vpop.eup %1231  ;;  %v550_v10 = vadd.f32 %v1872_v50, %v527_v59  ;;  %v506_v13 = vmul.f32 %v1230_v7, %v1845_v4 }
 0x1c9   : > { %v551_v16 = vadd.f32 %v1872_v50, %v528_v8  ;;  %v507_v60 = vmul.f32 %v1232_v9, %v1852_v11 }
 0x1ca   : > { %566 = vst [vmem:[#allocation2 + $0x58] sm:$0xff] %v550_v10  ;;  %v529_v27 = vmul.f32 %v1866_v42, %v506_v13 }
 0x1cb   : > { %v1234_v3 = vpop.eup %1233  ;;  %567 = vst [vmem:[#allocation2 + $0x60] sm:$0xff] %v551_v16  ;;  %v530_v17 = vmul.f32 %v1866_v42, %v507_v60 }
 0x1cc   : > { %v552_v18 = vadd.f32 %v1872_v50, %v529_v27  ;;  %v508_v21 = vmul.f32 %v1234_v3, %v1855_v12 }
 0x1cd   : > { %v553_v14 = vadd.f32 %v1872_v50, %v530_v17 }
 0x1ce   : > { %568 = vst [vmem:[#allocation2 + $0x68] sm:$0xff] %v552_v18  ;;  %v531_v4 = vmul.f32 %v1866_v42, %v508_v21 }
 0x1cf   : > { %569 = vst [vmem:[#allocation2 + $0x70] sm:$0xff] %v553_v14 }
 0x1d0   : > { %v554_v19 = vadd.f32 %v1872_v50, %v531_v4 }
 0x1d2   : > { %570 = vst [vmem:[#allocation2 + $0x78] sm:$0xff] %v554_v19 }
 0x1d3 PF: > { %v587_v11 = vld [vmem:[%s1743_s16] sm:$0xff]  ;;  %v588_v22 = vld [vmem:[%s1743_s16 + $0x8] sm:$0xff]  ;;  %v589_v12 = vld [vmem:[%s1743_s16 + $0x10] sm:$0xff]  ;;  %s2099_s28 = sld [smem:[#allocation12_spill]]  ;;  %s787_s13 = sshll.u32 %s1760_s4, 4  ;;  %s1962_s13 = int_to_ptr.vmem [resolvable:$true] %s787_s13 }
 0x1d4   : > { %v1017_v23 = vpack.c.bf16 %v588_v22, %v587_v11  ;;  %v590_v15 = vld [vmem:[%s1743_s16 + $0x18] sm:$0xff]  ;;  %v591_v42 = vld [vmem:[%s1743_s16 + $0x20] sm:$0xff]  ;;  %v592_v25 = vld [vmem:[%s1743_s16 + $0x28] sm:$0xff]  ;;  %s2101_s21 = sld [smem:[#allocation22_spill]]  ;;  %s2103_s5 = sld [smem:[#allocation17_spill]] }
 0x1d5   : > { %v1021_v24 = vpack.c.bf16 %v590_v15, %v589_v12  ;;  %v1025_v50 = vpack.c.bf16 %v592_v25, %v591_v42  ;;  %v571_v26 = vld [vmem:[#allocation2] sm:$0xff]  ;;  %v593_v29 = vld [vmem:[%s1743_s16 + $0x30] sm:$0xff]  ;;  %v594_v30 = vld [vmem:[%s1743_s16 + $0x38] sm:$0xff]  ;;  %s1970_s24 = scalar_lea.sflag [#allocation5], %s304_s7  ;;  %s1295_s0 = scalar_lea.vmem %s1962_s13, 2048 }
 0x1d6   : > { %1018 = vmatprep.subr.bf16.mxu0 %v1017_v23  ;;  %1049 = vmatprep.subr.bf16.mxu1 %v1017_v23  ;;  %v579_v28 = vld [vmem:[#allocation2 + $0x40] sm:$0xff]  ;;  %v1029_v31 = vpack.c.bf16 %v594_v30, %v593_v29  ;;  %v596_v32 = vld [vmem:[%s1743_s16 + $0x48] sm:$0xff]  ;;  %v597_v34 = vld [vmem:[%s1743_s16 + $0x50] sm:$0xff]  ;;  %p1296_p9 = scmp.ne.s32.totalorder %s1962_s13, %s1295_s0 }
 0x1d7   : > { %1020 = vmatpush3.bf16.msra.mxu0 %v1017_v23  ;;  %1057 = vmatpush3.bf16.msra.mxu1 %v1017_v23  ;;  %v595_v35 = vld [vmem:[%s1743_s16 + $0x40] sm:$0xff]  ;;  %v598_v37 = vld [vmem:[%s1743_s16 + $0x58] sm:$0xff]  ;;  %v600_v40 = vld [vmem:[%s1743_s16 + $0x68] sm:$0xff] }
 0x1d8   : > { %1022 = vmatprep.subr.bf16.mxu0 %v1021_v24  ;;  %1050 = vmatprep.subr.bf16.mxu1 %v1021_v24  ;;  %v1033_v33 = vpack.c.bf16 %v596_v32, %v595_v35  ;;  %v1037_v38 = vpack.c.bf16 %v598_v37, %v597_v34  ;;  %v599_v39 = vld [vmem:[%s1743_s16 + $0x60] sm:$0xff]  ;;  %v601_v36 = vld [vmem:[%s1743_s16 + $0x70] sm:$0xff]  ;;  %v602_v45 = vld [vmem:[%s1743_s16 + $0x78] sm:$0xff] }
 0x1d9   : > { %993 = vmatprep.mubr.f32.mxu0 %v571_v26  ;;  %1005 = vmatprep.mubr.f32.mxu1 %v579_v28  ;;  %v1041_v41 = vpack.c.bf16 %v600_v40, %v599_v39  ;;  %v1045_v46 = vpack.c.bf16 %v602_v45, %v601_v36  ;;  %v572_v47 = vld [vmem:[#allocation2 + $0x8] sm:$0xff]  ;;  %v573_v43 = vld [vmem:[#allocation2 + $0x10] sm:$0xff]  ;;  %v574_v53 = vld [vmem:[#allocation2 + $0x18] sm:$0xff]  ;;  %s1065_s10 = smul.u32 112, %s2099_s28  ;;  %s1452_s28 = smov [#allocation8]  }
 0x1da   : > { %v580_v48 = vld [vmem:[#allocation2 + $0x48] sm:$0xff]  ;;  %v581_v49 = vld [vmem:[#allocation2 + $0x50] sm:$0xff]  ;;  %v582_v54 = vld [vmem:[#allocation2 + $0x58] sm:$0xff]  ;;  %s2102_s8 = smov %s2101_s21  ;;  %p2104_p0 = scmp.ne.s32.totalorder %s2103_s5, 0 }
 0x1db   : > { %1024 = vmatpush3.bf16.msra.mxu0 %v1021_v24  ;;  %1058 = vmatpush3.bf16.msra.mxu1 %v1021_v24  ;;  %v575_v55 = vld [vmem:[#allocation2 + $0x20] sm:$0xff]  ;;  %v576_v57 = vld [vmem:[#allocation2 + $0x28] sm:$0xff]  ;;  %v577_v44 = vld [vmem:[#allocation2 + $0x30] sm:$0xff]  ;;  %s784_s30 = sadd.s32 %s1429_s27, %s1065_s10  ;;  %s1299_s17 = sshll.u32 %s1452_s28, 4  ;;  %s1300_s17 = int_to_ptr.vmem [resolvable:$false] %s1299_s17 }
 0x1dc   : > { %1026 = vmatprep.subr.bf16.mxu0 %v1025_v50  ;;  %1051 = vmatprep.subr.bf16.mxu1 %v1025_v50  ;;  %v583_v56 = vld [vmem:[#allocation2 + $0x60] sm:$0xff]  ;;  %v584_v58 = vld [vmem:[#allocation2 + $0x68] sm:$0xff]  ;;  %v585_v61 = vld [vmem:[#allocation2 + $0x70] sm:$0xff]  ;;  %s925_s15 = sshll.u32 %s784_s30, 7  ;;  %p1297_p4 = pnand %p1296_p9, %p2104_p0 }
 0x1dd   : > { %v578_v62 = vld [vmem:[#allocation2 + $0x38] sm:$0xff]  ;;  %v921_v20 = vld [vmem:[%s310_s1] ss:$0 sm:$0xff]  ;;  %s1960_s9 = scalar_lea.hbm %s2101_s21, %s925_s15  ;;  %s1301_s16 = scalar_lea.vmem %s1300_s17, 4096 }
 0x1de   : > { %v586_v51 = vld [vmem:[#allocation2 + $0x78] sm:$0xff]  ;;  %p1298_p10 = pneg %p1297_p4  ;;  %p1302_p8 = scmp.lt.s32.totalorder %s1962_s13, %s1300_s17 }
 0x1df   : > { %1028 = vmatpush3.bf16.msra.mxu0 %v1025_v50  ;;  %1059 = vmatpush3.bf16.msra.mxu1 %v1025_v50  ;;  %p1303_p11 = scmp.lt.s32.totalorder %s1301_s16, %s1295_s0 }
 0x1e0   : > { %1030 = vmatprep.subr.bf16.mxu0 %v1029_v31  ;;  %1052 = vmatprep.subr.bf16.mxu1 %v1029_v31 }
 0x1e1   : > { %p1304_p2 = por %p1303_p11, %p1302_p8 }
 0x1e3   : > { %1032 = vmatpush3.bf16.msra.mxu0 %v1029_v31  ;;  %1060 = vmatpush3.bf16.msra.mxu1 %v1029_v31  ;;  %p1305_p5 = pnand %p1304_p2, %p1298_p10 }
 0x1e4   : > { %1034 = vmatprep.subr.bf16.mxu0 %v1033_v33  ;;  %1053 = vmatprep.subr.bf16.mxu1 %v1033_v33 }
 0x1e7   : > { %1036 = vmatpush3.bf16.msra.mxu0 %v1033_v33  ;;  %1061 = vmatpush3.bf16.msra.mxu1 %v1033_v33 }
 0x1e8   : > { %1038 = vmatprep.subr.bf16.mxu0 %v1037_v38  ;;  %1054 = vmatprep.subr.bf16.mxu1 %v1037_v38 }
 0x1eb   : > { %1040 = vmatpush3.bf16.msra.mxu0 %v1037_v38  ;;  %1062 = vmatpush3.bf16.msra.mxu1 %v1037_v38 }
 0x1ec   : > { %1042 = vmatprep.subr.bf16.mxu0 %v1041_v41  ;;  %1055 = vmatprep.subr.bf16.mxu1 %v1041_v41 }
 0x1ef   : > { %1044 = vmatpush3.bf16.msra.mxu0 %v1041_v41  ;;  %1063 = vmatpush3.bf16.msra.mxu1 %v1041_v41 }
 0x1f0   : > { %1046 = vmatprep.subr.bf16.mxu0 %v1045_v46  ;;  %1056 = vmatprep.subr.bf16.mxu1 %v1045_v46 }
 0x1f3   : > { %1048 = vmatpush3.bf16.msra.mxu0 %v1045_v46  ;;  %1064 = vmatpush3.bf16.msra.mxu1 %v1045_v46 }
 0x1f6   : > { %994 = vmatmul.mubr.f32.vlgmr.msra.gmra.mrb[0].mxu0 %v572_v47  ;;  %1006 = vmatmul.mubr.f32.vlgmr.msra.gmra.mrb[0].mxu1 %v580_v48 }
 0x1f7   : > { %996 = vmatprep.mubr.f32.mxu0 %v573_v43  ;;  %1008 = vmatprep.mubr.f32.mxu1 %v581_v49 }
 0x1fa   : > { %997 = vmatmul.mubr.f32.gmra.mrb[2].mxu0 %v574_v53  ;;  %1009 = vmatmul.mubr.f32.gmra.mrb[2].mxu1 %v582_v54 }
 0x1fb   : > { %999 = vmatprep.mubr.f32.mxu0 %v575_v55  ;;  %1011 = vmatprep.mubr.f32.mxu1 %v583_v56 }
 0x1fe   : > { %1000 = vmatmul.mubr.f32.gmra.mrb[4].mxu0 %v576_v57  ;;  %1012 = vmatmul.mubr.f32.gmra.mrb[4].mxu1 %v584_v58 }
 0x1ff   : > { %1002 = vmatprep.mubr.f32.mxu0 %v577_v44  ;;  %1014 = vmatprep.mubr.f32.mxu1 %v585_v61 }
 0x202   : > { %1003 = vmatmul.mubr.f32.gmra.mrb[6].mxu0 %v578_v62  ;;  %1015 = vmatmul.mubr.f32.gmra.mrb[6].mxu1 %v586_v51 }
 0x2c9   : > { %v995_v63 = vpop.f32.mrb[0].mxu0  ;;  %v1007_v0 = vpop.f32.mrb[0].mxu1 }
 0x2ca   : > { %v682_v1 = vadd.f32 %v995_v63, %v921_v20  ;;  %v722_v2 = vadd.f32 %v1007_v0, %v921_v20  ;;  %v676_v5 = vpop.f32.mrb[1].mxu0  ;;  %v716_v6 = vpop.f32.mrb[1].mxu1 }
 0x2cb   : > { %v677_v52 = vadd.f32 %v921_v20, %v676_v5  ;;  %v717_v59 = vadd.f32 %v921_v20, %v716_v6 }
 0x2cc   : > { %756 = vst [vmem:[%s1760_s4 + $0x8] sm:$0xff] %v682_v1  ;;  %764 = vst [vmem:[%s1760_s4 + $0x48] sm:$0xff] %v722_v2 }
 0x2cd   : > { %755 = vst [vmem:[%s1760_s4] sm:$0xff] %v677_v52  ;;  %763 = vst [vmem:[%s1760_s4 + $0x40] sm:$0xff] %v717_v59  ;;  %v998_v7 = vpop.f32.mrb[2].mxu0  ;;  %v1010_v8 = vpop.f32.mrb[2].mxu1 }
 0x2ce   : > { %v692_v9 = vadd.f32 %v998_v7, %v921_v20  ;;  %v732_v10 = vadd.f32 %v1010_v8, %v921_v20  ;;  %v686_v13 = vpop.f32.mrb[3].mxu0  ;;  %v726_v16 = vpop.f32.mrb[3].mxu1 }
 0x2cf   : > { %v687_v60 = vadd.f32 %v921_v20, %v686_v13  ;;  %v727_v27 = vadd.f32 %v921_v20, %v726_v16 }
 0x2d0   : > { %758 = vst [vmem:[%s1760_s4 + $0x18] sm:$0xff] %v692_v9  ;;  %766 = vst [vmem:[%s1760_s4 + $0x58] sm:$0xff] %v732_v10 }
 0x2d1   : > { %757 = vst [vmem:[%s1760_s4 + $0x10] sm:$0xff] %v687_v60  ;;  %765 = vst [vmem:[%s1760_s4 + $0x50] sm:$0xff] %v727_v27  ;;  %v1001_v3 = vpop.f32.mrb[4].mxu0  ;;  %v1013_v17 = vpop.f32.mrb[4].mxu1 }
 0x2d2   : > { %v702_v18 = vadd.f32 %v1001_v3, %v921_v20  ;;  %v742_v21 = vadd.f32 %v1013_v17, %v921_v20  ;;  %v696_v14 = vpop.f32.mrb[5].mxu0  ;;  %v736_v4 = vpop.f32.mrb[5].mxu1 }
 0x2d3   : > { %v697_v19 = vadd.f32 %v921_v20, %v696_v14  ;;  %v737_v11 = vadd.f32 %v921_v20, %v736_v4 }
 0x2d4   : > { %760 = vst [vmem:[%s1760_s4 + $0x28] sm:$0xff] %v702_v18  ;;  %768 = vst [vmem:[%s1760_s4 + $0x68] sm:$0xff] %v742_v21 }
 0x2d5   : > { %759 = vst [vmem:[%s1760_s4 + $0x20] sm:$0xff] %v697_v19  ;;  %767 = vst [vmem:[%s1760_s4 + $0x60] sm:$0xff] %v737_v11  ;;  %v1004_v22 = vpop.f32.mrb[6].mxu0  ;;  %v1016_v12 = vpop.f32.mrb[6].mxu1 }
 0x2d6   : > { %v712_v23 = vadd.f32 %v1004_v22, %v921_v20  ;;  %v752_v15 = vadd.f32 %v1016_v12, %v921_v20  ;;  %v706_v24 = vpop.f32.mrb[7].mxu0  ;;  %v746_v42 = vpop.f32.mrb[7].mxu1 }
 0x2d7   : > { %v707_v25 = vadd.f32 %v921_v20, %v706_v24  ;;  %v747_v50 = vadd.f32 %v921_v20, %v746_v42 }
 0x2d8   : > { %762 = vst [vmem:[%s1760_s4 + $0x38] sm:$0xff] %v712_v23  ;;  %770 = vst [vmem:[%s1760_s4 + $0x78] sm:$0xff] %v752_v15 }
 0x2d9   : > { %761 = vst [vmem:[%s1760_s4 + $0x30] sm:$0xff] %v707_v25  ;;  %769 = vst [vmem:[%s1760_s4 + $0x70] sm:$0xff] %v747_v50 }
 0x2da   : > { %1308 = shalt.err (!%p1305_p5)
}
 0x2db   : > { %s1309_s7 = scalar_lea.hbm %s1960_s9, 2048  ;;  %s1313_s10 = scalar_lea.hbm %s2102_s8, 28672 }
 0x2dc   : > { %p1310_p3 = scmp.ne.s32.totalorder %s1960_s9, %s1309_s7  ;;  %p1314_p6 = scmp.lt.u32.totalorder %s1960_s9, %s2102_s8 }
 0x2dd   : > { %p1315_p1 = scmp.lt.u32.totalorder %s1313_s10, %s1309_s7  ;;  %p1317_p9 = scmp.lt.u32.totalorder %s1309_s7, %s1960_s9 }
 0x2de   : > { %p1311_p7 = pnand %p1310_p3, %p2104_p0 }
 0x2df   : > { %p1316_p12 = por %p1315_p1, %p1314_p6 }
 0x2e0   : > { %p1312_p13 = pneg %p1311_p7 }
 0x2e1   : > { %p1318_p4 = por %p1317_p9, %p1316_p12 }
 0x2e3   : > { %p1319_p10 = pnand %p1318_p4, %p1312_p13 }
 0x2e5   : > { %1322 = shalt.err (!%p1319_p10)
}
 0x2e6   : > { %s1453_s27 = smov 128   ;;  %s1454_s1 = smov 896  }
 0x2e7   : > { %s1455_s21 = smov 8  }
 0x2e8   : > { %1070 = dma.vmem_to_hbm [thread:$0]  (%p2104_p0), %s1962_s13, 2048, %s1960_s9, %s1970_s24, %s1453_s27, %s1454_s1, %s1455_s21  }
 0x2e9 PF: > { %p1084_p8 = scmp.ge.s32.totalorder %s1445_s6, 2  ;;  %s802_s0 = sand.u32 1, %s1393_s18  }
 0x2ea   : > { %p2105_p11 = scmp.ne.s32.totalorder %s2089_s11, 0  ;;  %s803_s28 = scalar_lea.sflag [#allocation5], %s802_s0 }
 0x2ec   : > { %p1080_p2 = pnand %p1084_p8, %p2105_p11 }
 0x2ee   : > { %1388 = dma.done.wait (!%p1080_p2), %s803_s28, 2048  }
 0x2ef   : > { %1390 = vsyncadd (!%p1080_p2), %s803_s28, 4294965248  ;;  %s24_s6 = sadd.s32 1, %s1445_s6   ;;  %s2107_s13 = sld [smem:[#allocation16_spill]] }
 0x2f0   : > { %p1999_p5 = scmp.ge.s32.totalorder %s24_s6, 16   ;;  %s2108_s28 = sld [smem:[#allocation13_spill]] }
 0x2f1   : > { %s2109_s11 = sld [smem:[#allocation14_spill]]  ;;  %s2110_s30 = sld [smem:[#allocation15_spill]] }
 0x2f2   : > { %s2111_s18 = smov %s1397_s19  ;;  %s2112_s19 = smov %s1401_s20 }
 0x2f3   : > { %s2113_s20 = smov %s1680_s2  ;;  %s2114_s21 = smov %s1409_s22 }
 0x2f4   : > { %s2115_s22 = smov %s1413_s23  ;;  %s2117_s24 = smov %s1421_s25 }
 0x2f5   : > { %s2116_s23 = smov %s2107_s13  ;;  %s2118_s25 = smov %s1425_s26 }
 0x2f6   : > { %s2119_s26 = smov %s1677_s14  ;;  %s2120_s27 = smov %s1437_s29 }
 0x2f7   : > { %s2121_s29 = smov %s2109_s11  ;;  %23 = sbr.rel (!%p1999_p5) target bundleno = 18 (0x12), region = 105 }
 0x2fe   :  { %808 = vsyncpa [#allocation4], 1 }
 0x2ff   :  { %810 = vsyncpa [#allocation4 + $0x1], 1 }
 0x300   :  { %811 = vsyncpa [#allocation7], 1 }
 0x301   :  { %813 = vsyncpa [#allocation7 + $0x1], 1 }
 0x302   :  { %814 = vsyncpa [#allocation5], 1 }
 0x303   :  { %816 = vsyncpa [#allocation5 + $0x1], 1 }

</bundles_post_ra>
